<compile_context>
chip_gen: v6e
topology: v6e:2x2x1
jax: 0.10.0
libtpu: 0.0.40
codegen_flags: <defaults>
</compile_context>

<pallas_src>
import jax
import jax.numpy as jnp
from jax.experimental import pallas as pl
from jax.experimental.pallas import tpu as pltpu


def kannet_kernel(x_ref, w1_ref, b1_ref, w2_ref, o_ref):
    # fc1 on the MXU: (tm, D) @ (D, H), f32 accumulate.
    h = jnp.dot(x_ref[...], w1_ref[...], preferred_element_type=jnp.float32)
    # bias + ReLU on the VPU.
    h = jnp.maximum(h + b1_ref[...], 0.0)
    # fc2 (H -> 1) as VPU multiply + cross-lane (XLU) reduction.  An (H, 1)
    # MXU matmul would produce 1 useful lane per pass and serialize behind
    # the fc1 result pop; the XLU slot is idle here so the reduce is ~free.
    row = jnp.sum(h * w2_ref[...], axis=-1)          # (tm,)
    # Lane-dense transposed store: one full (1, 1, tm) row per grid step.
    o_ref[...] = row.reshape(o_ref.shape).astype(o_ref.dtype)


def kannet_forward(x, w1, b1, w2_row, b2, *, tm=512):
    """x:(B,D) f32, w1:(D,H), b1:(1,H), w2_row:(1,H), b2:(1,1) -> (B,1)."""
    B, D = x.shape
    H = w1.shape[1]

    # Tile selection: big tiles amortize per-step overhead, but never bigger
    # than the (sublane-rounded) batch.  For multi-tile grids keep tm a
    # multiple of 128 so each output store fills full lanes; tm is always a
    # multiple of 8 (f32 sublane packing).
    B8 = pl.cdiv(B, 8) * 8
    if B8 <= tm:
        tm = B8                              # single grid step for small B
    else:
        tm = max(128, (tm // 128) * 128)     # lane-dense multi-tile grid

    B_pad = pl.cdiv(B, tm) * tm
    if B_pad != B:
        x = jnp.pad(x, ((0, B_pad - B), (0, 0)))
    num_tiles = B_pad // tm

    # NOTE: on v6e/v7x, casting x/w1 to bf16 in this wrapper (keeping the
    # f32 accumulate in the kernel) halves the dominant HBM read at scale.
    # Kept f32 here to match the PyTorch module's numerics exactly.
    out_t = pl.pallas_call(
        kannet_kernel,
        out_shape=jax.ShapeDtypeStruct((num_tiles, 1, tm), jnp.float32),
        grid_spec=pltpu.PrefetchScalarGridSpec(
            num_scalar_prefetch=0,
            grid=(num_tiles,),
            in_specs=[
                pl.BlockSpec((tm, D), lambda i: (i, 0)),   # x batch tile
                pl.BlockSpec((D, H), lambda i: (0, 0)),    # W1 (resident)
                pl.BlockSpec((1, H), lambda i: (0, 0)),    # b1 (resident)
                pl.BlockSpec((1, H), lambda i: (0, 0)),    # W2 row (resident)
            ],
            out_specs=pl.BlockSpec((1, 1, tm), lambda i: (i, 0, 0)),
        ),
        compiler_params=pltpu.CompilerParams(
            dimension_semantics=("parallel",),   # shardable across v7x TCs
        ),
    )(x, w1, b1, w2_row)

    # (num_tiles, 1, tm) -> (B, 1); fold the scalar fc2 bias here.
    return out_t.reshape(B_pad, 1)[:B] + b2


def init_kannet_params(key, input_dim, bottleneck_dim):
    """Deterministic PyTorch-style Linear init (uniform +/- 1/sqrt(fan_in))."""
    k1, k2, k3, k4 = jax.random.split(key, 4)
    bound1 = 1.0 / jnp.sqrt(jnp.float32(input_dim))
    bound2 = 1.0 / jnp.sqrt(jnp.float32(bottleneck_dim))
    # W1 stored transposed: (D, H).  W2 stored as a row: (1, H).
    w1 = jax.random.uniform(k1, (input_dim, bottleneck_dim), jnp.float32,
                            -bound1, bound1)
    b1 = jax.random.uniform(k2, (1, bottleneck_dim), jnp.float32,
                            -bound1, bound1)
    w2 = jax.random.uniform(k3, (1, bottleneck_dim), jnp.float32,
                            -bound2, bound2)
    b2 = jax.random.uniform(k4, (1, 1), jnp.float32, -bound2, bound2)
    # The PyTorch module also defines self.fc (input_dim -> 1) but never uses
    # it in forward(); it is intentionally not instantiated here.
    return w1, b1, w2, b2


if __name__ == "__main__":
    key = jax.random.PRNGKey(0)
    kx, kp = jax.random.split(key)

    batch = 256               # small, but enough for a 2-step grid
    input_dim = 20
    bottleneck_dim = 512      # module default

    x = jax.random.normal(kx, (batch, input_dim), jnp.float32)
    w1, b1, w2, b2 = init_kannet_params(kp, input_dim, bottleneck_dim)

    # tm=128 -> grid=(2,): exercises multi-tile, lane-dense stores, and
    # leaves the grid shardable across v7x's two TensorCores.
    out = kannet_forward(x, w1, b1, w2, b2, tm=128)
    out = jax.block_until_ready(out)

    # Pure-JAX reference (HIGHEST precision so the reference itself is exact).
    hi = jax.lax.Precision.HIGHEST
    h_ref = jnp.maximum(jnp.dot(x, w1, precision=hi) + b1, 0.0)
    ref = jnp.dot(h_ref, w2.T, precision=hi) + b2
    assert out.shape == (batch, 1)
    assert jnp.allclose(out, ref, atol=1e-4, rtol=1e-4)

    print("KERNEL_OK")
</pallas_src>

<mosaic_0001>
module attributes {stable_mosaic.version = 11 : i64} {
  func.func @kannet_kernel(%arg0: i32, %arg1: memref<128x20xf32, #tpu.memory_space<vmem>>, %arg2: memref<20x512xf32, #tpu.memory_space<vmem>>, %arg3: memref<1x512xf32, #tpu.memory_space<vmem>>, %arg4: memref<1x512xf32, #tpu.memory_space<vmem>>, %arg5: memref<1x1x128xf32, #tpu.memory_space<vmem>>) attributes {dimension_semantics = [#tpu.dimension_semantics<parallel>], iteration_bounds = array<i64: 2>, scalar_prefetch = 0 : i64, scratch_operands = 0 : i64, tpu.core_type = #tpu.core_type<tc>, window_params = [{transform_indices = @transform_0, window_bounds = array<i64: 128, 20>}, {pipeline_mode = #tpu.pipeline_mode<synchronous>, transform_indices = @transform_1, window_bounds = array<i64: 20, 512>}, {pipeline_mode = #tpu.pipeline_mode<synchronous>, transform_indices = @transform_2, window_bounds = array<i64: 1, 512>}, {pipeline_mode = #tpu.pipeline_mode<synchronous>, transform_indices = @transform_3, window_bounds = array<i64: 1, 512>}, {transform_indices = @transform_4, window_bounds = array<i64: 1, 1, 128>}]} {
    %c0 = arith.constant 0 : index
    %c0_0 = arith.constant 0 : index
    %0 = vector.load %arg1[%c0, %c0_0] : memref<128x20xf32, #tpu.memory_space<vmem>>, vector<128x20xf32>
    %c0_1 = arith.constant 0 : index
    %c0_2 = arith.constant 0 : index
    %1 = vector.load %arg2[%c0_1, %c0_2] : memref<20x512xf32, #tpu.memory_space<vmem>>, vector<20x512xf32>
    %cst = arith.constant dense<0.000000e+00> : vector<128x512xf32>
    %2 = tpu.matmul %0, %1, %cst {dimension_numbers = #tpu.dot_dimension_numbers<[1], [0], [0], [1], [0, 0, 1, 1], [], []>} : vector<128x20xf32>, vector<20x512xf32>, vector<128x512xf32> -> vector<128x512xf32>
    %c0_3 = arith.constant 0 : index
    %c0_4 = arith.constant 0 : index
    %3 = vector.load %arg3[%c0_3, %c0_4] : memref<1x512xf32, #tpu.memory_space<vmem>>, vector<1x512xf32>
    %4 = vector.broadcast %3 : vector<1x512xf32> to vector<128x512xf32>
    %5 = arith.addf %2, %4 : vector<128x512xf32>
    %cst_5 = arith.constant 0.000000e+00 : f32
    %6 = vector.broadcast %cst_5 : f32 to vector<128x512xf32>
    %7 = arith.maximumf %5, %6 : vector<128x512xf32>
    %c0_6 = arith.constant 0 : index
    %c0_7 = arith.constant 0 : index
    %8 = vector.load %arg4[%c0_6, %c0_7] : memref<1x512xf32, #tpu.memory_space<vmem>>, vector<1x512xf32>
    %9 = vector.broadcast %8 : vector<1x512xf32> to vector<128x512xf32>
    %10 = arith.mulf %7, %9 : vector<128x512xf32>
    %cst_8 = arith.constant dense<0.000000e+00> : vector<128xf32>
    %11 = vector.multi_reduction <add>, %10, %cst_8 [1] : vector<128x512xf32> to vector<128xf32>
    %12 = vector.shape_cast %11 : vector<128xf32> to vector<1x1x128xf32>
    %c0_9 = arith.constant 0 : index
    %c0_10 = arith.constant 0 : index
    %c0_11 = arith.constant 0 : index
    %13 = vector.load %arg5[%c0_9, %c0_10, %c0_11] : memref<1x1x128xf32, #tpu.memory_space<vmem>>, vector<1x1x128xf32>
    tpu.vector_store %arg5[%c0_9, %c0_10, %c0_11], %12 {strides = array<i32>} : memref<1x1x128xf32, #tpu.memory_space<vmem>>, vector<1x1x128xf32>,
    return
  }
  func.func @transform_0(%arg0: i32) -> (i32, i32) {
    %c0_i32 = arith.constant 0 : i32
    %c0_i32_0 = arith.constant 0 : i32
    return %arg0, %c0_i32 : i32, i32
  }
  func.func @transform_1(%arg0: i32) -> (i32, i32) {
    %c0_i32 = arith.constant 0 : i32
    %c0_i32_0 = arith.constant 0 : i32
    %c0_i32_1 = arith.constant 0 : i32
    return %c0_i32, %c0_i32_0 : i32, i32
  }
  func.func @transform_2(%arg0: i32) -> (i32, i32) {
    %c0_i32 = arith.constant 0 : i32
    %c0_i32_0 = arith.constant 0 : i32
    %c0_i32_1 = arith.constant 0 : i32
    return %c0_i32, %c0_i32_0 : i32, i32
  }
  func.func @transform_3(%arg0: i32) -> (i32, i32) {
    %c0_i32 = arith.constant 0 : i32
    %c0_i32_0 = arith.constant 0 : i32
    %c0_i32_1 = arith.constant 0 : i32
    return %c0_i32, %c0_i32_0 : i32, i32
  }
  func.func @transform_4(%arg0: i32) -> (i32, i32, i32) {
    %c0_i32 = arith.constant 0 : i32
    %c0_i32_0 = arith.constant 0 : i32
    %c0_i32_1 = arith.constant 0 : i32
    return %arg0, %c0_i32, %c0_i32_0 : i32, i32, i32
  }
}

</mosaic_0001>

<bundles_post_ra>
// kernel: tpu_custom_call.1
= control target key start
LH: loop header
LB: loop body
LE: loop exit
PB: predicated region body
PF: predicated region fallthrough
CT: control target
= control target key end

     0   :  { %9 = vsyncpa [#allocation3], 0  ;;  %s1628_s0 = inlined_call_operand.vmem [shape: f32[256,20], index: 0, kind: input, shape index: {}]   ;;  %s1629_s1 = inlined_call_operand.vmem [shape: f32[20,512], index: 1, kind: input, shape index: {}]   ;;  %s1630_s2 = inlined_call_operand.vmem [shape: f32[1,512], index: 2, kind: input, shape index: {}]   ;;  %s1631_s3 = inlined_call_operand.vmem [shape: f32[1,512], index: 3, kind: input, shape index: {}]   ;;  %s1632_s4 = inlined_call_operand.hbm [shape: f32[2,1,128], index: 4, kind: output, shape index: {}]  }
   0x1   :  { %11 = vsyncpa [#allocation3 + $0x1], 0  ;;  %s1232_s15 = smov 0   ;;  %s1234_s16 = smov 0  }
   0x2   :  { %s1236_s17 = smov 0   ;;  %s1238_s18 = smov 0  }
   0x3 LB: > { %s1057_s19 = sadd.s32 4294967295, %s1203_s18   ;;  %s1058_s20 = sadd.s32 4294967294, %s1203_s18   ;;  %s1203_s18 = sphi %s1238_s18, %s1638_s18   ;;  %s1199_s17 = sphi %s1236_s17, %s1637_s17   ;;  %s1195_s16 = sphi %s1234_s16, %s1636_s16   ;;  %s1191_s15 = sphi %s1232_s15, %s1635_s15  }
   0x4   : > { %s1255_s21 = sadd.s32 1, %s1203_s18   ;;  %s113_s22 = sadd.s32 1, %s1199_s17 }
   0x5   : > { %s110_s23 = ssub.s32 %s1203_s18, %s1255_s21  ;;  %p123_p0 = scmp.ne.s32.totalorder %s1199_s17, %s1195_s16 }
   0x6   : > { %p111_p1 = scmp.eq.s32.totalorder %s110_s23, 0  ;;  %p124_p2 = scmp.eq.s32.totalorder %s1057_s19, 1 }
   0x7   : > { %p129_p3 = scmp.ne.s32.totalorder %s1195_s16, %s1191_s15  ;;  %p130_p4 = scmp.eq.s32.totalorder %s1058_s20, 1 }
   0x8   : > { %s1265_s24 = scalar_select %p111_p1, %s1199_s17, %s113_s22  }
   0x9   : > { %p1267_p5 = por %p124_p2, %p123_p0  ;;  %p1271_p6 = por %p130_p4, %p129_p3 }
   0xa   : > { %p1061_p7 = scmp.ge.s32.totalorder %s1203_s18, 1  ;;  %p166_p8 = scmp.lt.s32.totalorder %s1203_s18, 3 }
   0xc   : > { %p167_p9 = pnand %p1061_p7, %p166_p8 }
   0xd   : > { %s1301_s23 = sshll.u32 (!%p167_p9), %s1057_s19, 4  ;;  %s189_s27 = sand.u32 (!%p167_p9), 1, %s1195_s16  }
   0xe   : > { %170 = sbr.rel (%p167_p9) target bundleno = 448 (0x1c0), region = 36  ;;  %p192_p10 = scmp.lt.s32.totalorder (!%p167_p9), %s1301_s23, 31 }
   0xf   : > { %s190_s28 = scalar_lea.vmem (!%p167_p9), [#allocation2], %s189_s27  ;;  %s1591_s6 = scalar_lea.hbm (!%p167_p9), %s1632_s4, %s1301_s23 }
  0x10   : > { %s1003_s29 = sshll.u32 (!%p167_p9), %s190_s28, 4  ;;  %s1206_s8 = smov (!%p167_p9), [#allocation2]   ;;  %s1004_s29 = int_to_ptr.vmem [resolvable:$true] %s1003_s29 }
  0x11   : > { %s1143_s7 = scalar_lea.vmem (!%p167_p9), %s1004_s29, 16 }
  0x12   : > { %p1144_p11 = scmp.ne.s32.totalorder (!%p167_p9), %s1004_s29, %s1143_s7 }
  0x13   : > { %v222_v0 = vld [vmem:[%s1629_s1 + $0x48] sm:$0xf]  ;;  %vm296_vm0 = vcmask 1043456   ;;  %v221_v1 = vld [vmem:[%s1629_s1 + $0x40] sm:$0xf]  ;;  %v220_v7 = vld [vmem:[%s1629_s1 + $0x38] sm:$0xff]  ;;  %v227_v29 = vlaneseq }
  0x14   : > { %v218_v2 = vld [vmem:[%s1629_s1 + $0x28] sm:$0xff]  ;;  %1064 = vmatprep.subr.msk.mxu0 %vm296_vm0, %v222_v0  ;;  %v224_v3 = vld [vmem:[%s1629_s1 + $0x58] sm:$0xf]  ;;  %v217_v4 = vld [vmem:[%s1629_s1 + $0x20] sm:$0xff]  ;;  %v1205_v11 = vmov 0.0   ;;  %s193_s19 = scalar_select %p192_p10, %s1301_s23, 31 }
  0x15   : > { %v223_v5 = vld [vmem:[%s1629_s1 + $0x50] sm:$0xf]  ;;  %1065 = vmatpush1.msk.msra.mxu0 %vm296_vm0, %v221_v1  ;;  %1082 = vmatprep.subr.msk.mxu1 %vm296_vm0, %v224_v3  ;;  %v214_v6 = vld [vmem:[%s1629_s1 + $0x8] sm:$0xff]  ;;  %v213_v8 = vld [vmem:[%s1629_s1] sm:$0xff]  ;;  %vm247_vm1 = vcmask 162816   ;;  %v1403_v30 = vshrl.u32 %v227_v29, 7  ;;  %p1145_p12 = pnand %p1144_p11, %p1267_p5 }
  0x16   : > { %337 = vmatprep.subr.mxu0 %v218_v2  ;;  %1083 = vmatpush1.msk.msra.mxu1 %vm296_vm0, %v223_v5  ;;  %v219_v9 = vld [vmem:[%s1629_s1 + $0x30] sm:$0xff]  ;;  %v216_v10 = vld [vmem:[%s1629_s1 + $0x18] sm:$0xff]  ;;  %s1063_s9 = sshll.u32 %s193_s19, 3  ;;  %v225_v33 = vld [vmem:[%s1630_s2] sm:$0xf]  ;;  %vm888_vm2 = vcmask 130112  }
  0x17   : > { %338 = vmatpush1.msra.mxu0 %v217_v4  ;;  %498 = vmatprep.subr.mxu1 %v220_v7  ;;  %v215_v12 = vld [vmem:[%s1629_s1 + $0x10] sm:$0xff]  ;;  %s1322_s12 = scalar_lea.vmem %s1628_s0, %s1063_s9  ;;  %v229_v31 = vsub.s32 0, %v1403_v30  ;;  %v237_v32 = vsub.s32 2, %v1403_v30  ;;  %v233_v34 = vsub.s32 1, %v1403_v30  ;;  %v241_v35 = vsub.s32 3, %v1403_v30  ;;  %s991_s19 = scalar_lea.sflag [#allocation3], %s189_s27 }
  0x18   : > { %339 = vmatprep.subr.mxu0 %v214_v6  ;;  %373 = vmatprep.mubr.f32.mxu0 %v1205_v11  ;;  %v197_v13 = vld [vmem:[%s1322_s12] sm:$0xff]  ;;  %v198_v14 = vld [vmem:[%s1322_s12 + $0x8] sm:$0xff]  ;;  %v199_v15 = vld [vmem:[%s1322_s12 + $0x10] sm:$0xff]  ;;  %vm895_vm3 = vcmask 195712   ;;  %vm902_vm4 = vcmask 261312   ;;  %vm909_vm5 = vcmask 326912   ;;  %p1146_p13 = pneg %p1145_p12 }
  0x19   : > { %340 = vmatpush1.msra.mxu0 %v213_v8  ;;  %499 = vmatpush1.msra.mxu1 %v219_v9  ;;  %v200_v16 = vld [vmem:[%s1322_s12 + $0x18] sm:$0xff]  ;;  %v201_v17 = vld [vmem:[%s1322_s12 + $0x20] sm:$0xff]  ;;  %v202_v18 = vld [vmem:[%s1322_s12 + $0x28] sm:$0xff]  ;;  %v1412_v36 = vrot.slane %v225_v33, %v229_v31  ;;  %v1414_v37 = vrot.slane %v225_v33, %v237_v32  ;;  %v1416_v38 = vrot.slane %v225_v33, %v233_v34  ;;  %vm916_vm6 = vcmask 392512   ;;  %s1147_s9 = sshll.u32 %s1206_s8, 4  ;;  %s1148_s9 = int_to_ptr.vmem [resolvable:$false] %s1147_s9 }
  0x1a   : > { %500 = vmatprep.subr.mxu1 %v216_v10  ;;  %534 = vmatprep.mubr.f32.mxu1 %v1205_v11  ;;  %v203_v19 = vld [vmem:[%s1322_s12 + $0x30] sm:$0xff]  ;;  %v204_v20 = vld [vmem:[%s1322_s12 + $0x38] sm:$0xff]  ;;  %v205_v21 = vld [vmem:[%s1322_s12 + $0x40] sm:$0xff]  ;;  %v1418_v39 = vrot.slane %v225_v33, %v241_v35  ;;  %vm923_vm7 = vcmask 458112   ;;  %vm930_vm8 = vcmask 523712   ;;  %vm937_vm9 = vcmask 589312   ;;  %p1150_p0 = scmp.lt.s32.totalorder %s1004_s29, %s1148_s9 }
  0x1b   : > { %501 = vmatpush1.msra.mxu1 %v215_v12  ;;  %1066 = vmatmul.mubr.msk.f32.vlgmr.msra.gmra.mxu0 %vm247_vm1, %v197_v13  ;;  %v206_v22 = vld [vmem:[%s1322_s12 + $0x48] sm:$0xff]  ;;  %v207_v23 = vld [vmem:[%s1322_s12 + $0x50] sm:$0xff]  ;;  %v208_v24 = vld [vmem:[%s1322_s12 + $0x58] sm:$0xff]  ;;  %vm944_vm10 = vcmask 654912   ;;  %vm951_vm11 = vcmask 720512   ;;  %vm958_vm12 = vcmask 786112  }
  0x1c   : > { %1084 = vmatmul.mubr.msk.f32.vlgmr.msra.gmra.mxu1 %vm247_vm1, %v197_v13  ;;  %379 = vmatprep.mubr.f32.mxu0 %v1205_v11  ;;  %v209_v25 = vld [vmem:[%s1322_s12 + $0x60] sm:$0xff]  ;;  %v210_v26 = vld [vmem:[%s1322_s12 + $0x68] sm:$0xff]  ;;  %v211_v27 = vld [vmem:[%s1322_s12 + $0x70] sm:$0xff]  ;;  %vm965_vm13 = vcmask 851712   ;;  %vm972_vm14 = vcmask 917312   ;;  %vm979_vm15 = vcmask 982912  }
  0x1d   : > { %540 = vmatprep.mubr.f32.mxu1 %v1205_v11  ;;  %v212_v28 = vld [vmem:[%s1322_s12 + $0x78] sm:$0xff]  ;;  %v695_v43 = vld [vmem:[%s1631_s3] sm:$0xf]  ;;  %vm986_vm0 = vcmask 1048512   ;;  %s1149_s10 = scalar_lea.vmem %s1148_s9, 32 }
  0x1e   : > { %v1426_v48 = vrot.slane %v695_v43, %v233_v34  ;;  %v1429_v51 = vrot.slane %v695_v43, %v229_v31  ;;  %v1431_v53 = vrot.slane %v695_v43, %v237_v32  ;;  %v1435_v62 = vrot.slane %v695_v43, %v241_v35  ;;  %p1151_p1 = scmp.lt.s32.totalorder %s1149_s10, %s1143_s7 }
  0x1f   : > { %1067 = vmatmul.mubr.msk.f32.gmra.mxu0 %vm247_vm1, %v198_v14 }
  0x20   : > { %1085 = vmatmul.mubr.msk.f32.gmra.mxu1 %vm247_vm1, %v198_v14  ;;  %385 = vmatprep.mubr.f32.mxu0 %v1205_v11  ;;  %p1152_p2 = por %p1151_p1, %p1150_p0 }
  0x21   : > { %546 = vmatprep.mubr.f32.mxu1 %v1205_v11 }
  0x22   : > { %p1153_p3 = pnand %p1152_p2, %p1146_p13 }
  0x23   : > { %1068 = vmatmul.mubr.msk.f32.gmra.mxu0 %vm247_vm1, %v199_v15 }
  0x24   : > { %1086 = vmatmul.mubr.msk.f32.gmra.mxu1 %vm247_vm1, %v199_v15  ;;  %391 = vmatprep.mubr.f32.mxu0 %v1205_v11 }
  0x25   : > { %552 = vmatprep.mubr.f32.mxu1 %v1205_v11 }
  0x27   : > { %1069 = vmatmul.mubr.msk.f32.gmra.mxu0 %vm247_vm1, %v200_v16 }
  0x28   : > { %1087 = vmatmul.mubr.msk.f32.gmra.mxu1 %vm247_vm1, %v200_v16  ;;  %397 = vmatprep.mubr.f32.mxu0 %v1205_v11 }
  0x29   : > { %558 = vmatprep.mubr.f32.mxu1 %v1205_v11 }
  0x2b   : > { %1070 = vmatmul.mubr.msk.f32.gmra.mxu0 %vm247_vm1, %v201_v17 }
  0x2c   : > { %1088 = vmatmul.mubr.msk.f32.gmra.mxu1 %vm247_vm1, %v201_v17  ;;  %403 = vmatprep.mubr.f32.mxu0 %v1205_v11 }
  0x2d   : > { %564 = vmatprep.mubr.f32.mxu1 %v1205_v11 }
  0x2f   : > { %1071 = vmatmul.mubr.msk.f32.gmra.mxu0 %vm247_vm1, %v202_v18 }
  0x30   : > { %1089 = vmatmul.mubr.msk.f32.gmra.mxu1 %vm247_vm1, %v202_v18  ;;  %409 = vmatprep.mubr.f32.mxu0 %v1205_v11 }
  0x31   : > { %570 = vmatprep.mubr.f32.mxu1 %v1205_v11 }
  0x33   : > { %1072 = vmatmul.mubr.msk.f32.gmra.mxu0 %vm247_vm1, %v203_v19 }
  0x34   : > { %1090 = vmatmul.mubr.msk.f32.gmra.mxu1 %vm247_vm1, %v203_v19  ;;  %415 = vmatprep.mubr.f32.mxu0 %v1205_v11 }
  0x35   : > { %576 = vmatprep.mubr.f32.mxu1 %v1205_v11 }
  0x37   : > { %1073 = vmatmul.mubr.msk.f32.gmra.mxu0 %vm247_vm1, %v204_v20 }
  0x38   : > { %1091 = vmatmul.mubr.msk.f32.gmra.mxu1 %vm247_vm1, %v204_v20  ;;  %421 = vmatprep.mubr.f32.mxu0 %v1205_v11 }
  0x39   : > { %582 = vmatprep.mubr.f32.mxu1 %v1205_v11 }
  0x3b   : > { %1074 = vmatmul.mubr.msk.f32.gmra.mxu0 %vm247_vm1, %v205_v21 }
  0x3c   : > { %1092 = vmatmul.mubr.msk.f32.gmra.mxu1 %vm247_vm1, %v205_v21  ;;  %427 = vmatprep.mubr.f32.mxu0 %v1205_v11 }
  0x3d   : > { %588 = vmatprep.mubr.f32.mxu1 %v1205_v11 }
  0x3f   : > { %1075 = vmatmul.mubr.msk.f32.gmra.mxu0 %vm247_vm1, %v206_v22 }
  0x40   : > { %1093 = vmatmul.mubr.msk.f32.gmra.mxu1 %vm247_vm1, %v206_v22  ;;  %433 = vmatprep.mubr.f32.mxu0 %v1205_v11 }
  0x41   : > { %594 = vmatprep.mubr.f32.mxu1 %v1205_v11 }
  0x43   : > { %1076 = vmatmul.mubr.msk.f32.gmra.mxu0 %vm247_vm1, %v207_v23 }
  0x44   : > { %1094 = vmatmul.mubr.msk.f32.gmra.mxu1 %vm247_vm1, %v207_v23  ;;  %439 = vmatprep.mubr.f32.mxu0 %v1205_v11 }
  0x45   : > { %600 = vmatprep.mubr.f32.mxu1 %v1205_v11 }
  0x47   : > { %1077 = vmatmul.mubr.msk.f32.gmra.mxu0 %vm247_vm1, %v208_v24 }
  0x48   : > { %1095 = vmatmul.mubr.msk.f32.gmra.mxu1 %vm247_vm1, %v208_v24  ;;  %445 = vmatprep.mubr.f32.mxu0 %v1205_v11 }
  0x49   : > { %606 = vmatprep.mubr.f32.mxu1 %v1205_v11 }
  0x4b   : > { %1078 = vmatmul.mubr.msk.f32.gmra.mxu0 %vm247_vm1, %v209_v25 }
  0x4c   : > { %1096 = vmatmul.mubr.msk.f32.gmra.mxu1 %vm247_vm1, %v209_v25  ;;  %451 = vmatprep.mubr.f32.mxu0 %v1205_v11 }
  0x4d   : > { %612 = vmatprep.mubr.f32.mxu1 %v1205_v11 }
  0x4f   : > { %1079 = vmatmul.mubr.msk.f32.gmra.mxu0 %vm247_vm1, %v210_v26 }
  0x50   : > { %1097 = vmatmul.mubr.msk.f32.gmra.mxu1 %vm247_vm1, %v210_v26  ;;  %457 = vmatprep.mubr.f32.mxu0 %v1205_v11 }
  0x51   : > { %618 = vmatprep.mubr.f32.mxu1 %v1205_v11 }
  0x53   : > { %1080 = vmatmul.mubr.msk.f32.gmra.mxu0 %vm247_vm1, %v211_v27 }
  0x54   : > { %1098 = vmatmul.mubr.msk.f32.gmra.mxu1 %vm247_vm1, %v211_v27  ;;  %463 = vmatprep.mubr.f32.mxu0 %v1205_v11 }
  0x55   : > { %624 = vmatprep.mubr.f32.mxu1 %v1205_v11 }
  0x57   : > { %1081 = vmatmul.mubr.msk.f32.gmra.mxu0 %vm247_vm1, %v212_v28 }
  0x58   : > { %1099 = vmatmul.mubr.msk.f32.gmra.mxu1 %vm247_vm1, %v212_v28 }
  0xdb   : > { %v375_v40 = vpop.f32.mrf.mxu0 }
  0xdc   : > { %v536_v41 = vpop.f32.mrf.mxu1  ;;  %v376_v42 = vadd.f32 %v375_v40, %v1412_v36 }
  0xdd   : > { %v537_v44 = vadd.f32 %v536_v41, %v1414_v37  ;;  %v377_v45 = vpop.f32.mrf.mxu0 }
  0xde   : > { %v538_v46 = vpop.f32.mrf.mxu1  ;;  %v378_v47 = vadd.f32 %v377_v45, %v1416_v38  ;;  %v631_v50 = vmax.f32 %v376_v42, 0.0 }
  0xdf   : > { %v539_v49 = vadd.f32 %v538_v46, %v1418_v39  ;;  %v633_v52 = vmax.f32 %v537_v44, 0.0  ;;  %v381_v54 = vpop.f32.mrf.mxu0 }
  0xe0   : > { %v542_v55 = vpop.f32.mrf.mxu1  ;;  %v632_v56 = vmax.f32 %v378_v47, 0.0  ;;  %v382_v57 = vadd.f32 %v381_v54, %v1412_v36  ;;  %v717_v3 = vmul.f32 %v1429_v51, %v631_v50 }
  0xe1   : > { %v634_v58 = vmax.f32 %v539_v49, 0.0  ;;  %v383_v59 = vpop.f32.mrf.mxu0  ;;  %v543_v60 = vadd.f32 %v542_v55, %v1414_v37  ;;  %v719_v4 = vmul.f32 %v1431_v53, %v633_v52 }
  0xe2   : > { %v544_v61 = vpop.f32.mrf.mxu1  ;;  %v718_v63 = vmul.f32 %v1426_v48, %v632_v56  ;;  %v635_v0 = vmax.f32 %v382_v57, 0.0  ;;  %v384_v1 = vadd.f32 %v383_v59, %v1416_v38 }
  0xe3   : > { %v545_v2 = vadd.f32 %v544_v61, %v1418_v39  ;;  %v637_v5 = vmax.f32 %v543_v60, 0.0  ;;  %v387_v6 = vpop.f32.mrf.mxu0  ;;  %v720_v14 = vmul.f32 %v1435_v62, %v634_v58 }
  0xe4   : > { %v548_v7 = vpop.f32.mrf.mxu1  ;;  %v636_v8 = vmax.f32 %v384_v1, 0.0  ;;  %v388_v9 = vadd.f32 %v387_v6, %v1412_v36  ;;  %v781_v15 = vadd.f32 %v718_v63, %v717_v3  ;;  %v721_v16 = vmul.f32 %v1429_v51, %v635_v0 }
  0xe5   : > { %v638_v10 = vmax.f32 %v545_v2, 0.0  ;;  %v389_v11 = vpop.f32.mrf.mxu0  ;;  %v549_v12 = vadd.f32 %v548_v7, %v1414_v37  ;;  %v723_v18 = vmul.f32 %v1431_v53, %v637_v5 }
  0xe6   : > { %v550_v13 = vpop.f32.mrf.mxu1  ;;  %v722_v17 = vmul.f32 %v1426_v48, %v636_v8  ;;  %v390_v19 = vadd.f32 %v389_v11, %v1416_v38  ;;  %v639_v20 = vmax.f32 %v388_v9, 0.0  ;;  %v782_v25 = vadd.f32 %v781_v15, %v719_v4 }
  0xe7   : > { %v641_v21 = vmax.f32 %v549_v12, 0.0  ;;  %v393_v22 = vpop.f32.mrf.mxu0  ;;  %v551_v23 = vadd.f32 %v550_v13, %v1418_v39  ;;  %v724_v31 = vmul.f32 %v1435_v62, %v638_v10 }
  0xe8   : > { %v554_v24 = vpop.f32.mrf.mxu1  ;;  %v786_v26 = vadd.f32 %v722_v17, %v721_v16  ;;  %v640_v27 = vmax.f32 %v390_v19, 0.0  ;;  %v394_v28 = vadd.f32 %v393_v22, %v1412_v36  ;;  %v783_v35 = vadd.f32 %v782_v25, %v720_v14 }
  0xe9   : > { %v642_v32 = vmax.f32 %v551_v23, 0.0  ;;  %v395_v33 = vpop.f32.mrf.mxu0  ;;  %v555_v34 = vadd.f32 %v554_v24, %v1414_v37  ;;  %v725_v45 = vmul.f32 %v1429_v51, %v639_v20  ;;  %v727_v46 = vmul.f32 %v1431_v53, %v641_v21 }
  0xea   : > { %v556_v40 = vpop.f32.mrf.mxu1  ;;  %v726_v41 = vmul.f32 %v1426_v48, %v640_v27  ;;  %v643_v42 = vmax.f32 %v394_v28, 0.0  ;;  %v396_v43 = vadd.f32 %v395_v33, %v1416_v38  ;;  %784 = vadd.xlane.f32.xlu0 %v783_v35  ;;  %v787_v52 = vadd.f32 %v786_v26, %v723_v18 }
  0xeb   : > { %v557_v44 = vadd.f32 %v556_v40, %v1418_v39  ;;  %v645_v47 = vmax.f32 %v555_v34, 0.0  ;;  %v399_v49 = vpop.f32.mrf.mxu0  ;;  %v728_v56 = vmul.f32 %v1435_v62, %v642_v32 }
  0xec   : > { %v560_v50 = vpop.f32.mrf.mxu1  ;;  %v644_v54 = vmax.f32 %v396_v43, 0.0  ;;  %v400_v55 = vadd.f32 %v399_v49, %v1412_v36  ;;  %v788_v60 = vadd.f32 %v787_v52, %v724_v31  ;;  %v791_v63 = vadd.f32 %v726_v41, %v725_v45 }
  0xed   : > { %v646_v57 = vmax.f32 %v557_v44, 0.0  ;;  %v401_v58 = vpop.f32.mrf.mxu0  ;;  %v561_v59 = vadd.f32 %v560_v50, %v1414_v37  ;;  %v729_v0 = vmul.f32 %v1429_v51, %v643_v42  ;;  %v731_v4 = vmul.f32 %v1431_v53, %v645_v47 }
  0xee   : > { %v562_v61 = vpop.f32.mrf.mxu1  ;;  %v730_v1 = vmul.f32 %v1426_v48, %v644_v54  ;;  %v647_v2 = vmax.f32 %v400_v55, 0.0  ;;  %v402_v3 = vadd.f32 %v401_v58, %v1416_v38  ;;  %789 = vadd.xlane.f32.xlu0 %v788_v60  ;;  %v792_v9 = vadd.f32 %v791_v63, %v727_v46 }
  0xef   : > { %v649_v5 = vmax.f32 %v561_v59, 0.0  ;;  %v405_v6 = vpop.f32.mrf.mxu0  ;;  %v563_v7 = vadd.f32 %v562_v61, %v1418_v39  ;;  %v732_v14 = vmul.f32 %v1435_v62, %v646_v57 }
  0xf0   : > { %v566_v8 = vpop.f32.mrf.mxu1  ;;  %v796_v10 = vadd.f32 %v730_v1, %v729_v0  ;;  %v648_v11 = vmax.f32 %v402_v3, 0.0  ;;  %v406_v12 = vadd.f32 %v405_v6, %v1412_v36  ;;  %v733_v13 = vmul.f32 %v1429_v51, %v647_v2 }
  0xf1   : > { %v407_v15 = vpop.f32.mrf.mxu0  ;;  %v567_v16 = vadd.f32 %v566_v8, %v1414_v37  ;;  %v793_v17 = vadd.f32 %v792_v9, %v728_v56  ;;  %v735_v23 = vmul.f32 %v1431_v53, %v649_v5  ;;  %v650_v24 = vmax.f32 %v563_v7, 0.0 }
  0xf2   : > { %v568_v18 = vpop.f32.mrf.mxu1  ;;  %v734_v19 = vmul.f32 %v1426_v48, %v648_v11  ;;  %v651_v20 = vmax.f32 %v406_v12, 0.0  ;;  %v408_v21 = vadd.f32 %v407_v15, %v1416_v38  ;;  %v797_v28 = vadd.f32 %v796_v10, %v731_v4 }
  0xf3   : > { %v569_v22 = vadd.f32 %v568_v18, %v1418_v39  ;;  %v653_v25 = vmax.f32 %v567_v16, 0.0  ;;  %794 = vadd.xlane.f32.xlu1 %v793_v17  ;;  %v411_v26 = vpop.f32.mrf.mxu0  ;;  %v736_v49 = vmul.f32 %v1435_v62, %v650_v24 }
  0xf4   : > { %v572_v27 = vpop.f32.mrf.mxu1  ;;  %v801_v31 = vadd.f32 %v734_v19, %v733_v13  ;;  %v652_v32 = vmax.f32 %v408_v21, 0.0  ;;  %v412_v33 = vadd.f32 %v411_v26, %v1412_v36  ;;  %v737_v34 = vmul.f32 %v1429_v51, %v651_v20 }
  0xf5   : > { %v654_v35 = vmax.f32 %v569_v22, 0.0  ;;  %v413_v40 = vpop.f32.mrf.mxu0  ;;  %v573_v41 = vadd.f32 %v572_v27, %v1414_v37  ;;  %v798_v42 = vadd.f32 %v797_v28, %v732_v14  ;;  %v739_v50 = vmul.f32 %v1431_v53, %v653_v25 }
  0xf6   : > { %v574_v43 = vpop.f32.mrf.mxu1  ;;  %v738_v44 = vmul.f32 %v1426_v48, %v652_v32  ;;  %v655_v45 = vmax.f32 %v412_v33, 0.0  ;;  %v414_v46 = vadd.f32 %v413_v40, %v1416_v38  ;;  %v802_v56 = vadd.f32 %v801_v31, %v735_v23 }
  0xf7   : > { %v575_v47 = vadd.f32 %v574_v43, %v1418_v39  ;;  %v657_v52 = vmax.f32 %v573_v41, 0.0  ;;  %799 = vadd.xlane.f32.xlu1 %v798_v42  ;;  %v417_v54 = vpop.f32.mrf.mxu0  ;;  %v740_v60 = vmul.f32 %v1435_v62, %v654_v35 }
  0xf8   : > { %v578_v55 = vpop.f32.mrf.mxu1  ;;  %v806_v57 = vadd.f32 %v738_v44, %v737_v34  ;;  %v656_v58 = vmax.f32 %v414_v46, 0.0  ;;  %v418_v59 = vadd.f32 %v417_v54, %v1412_v36  ;;  %v803_v1 = vadd.f32 %v802_v56, %v736_v49 }
  0xf9   : > { %v658_v61 = vmax.f32 %v575_v47, 0.0  ;;  %v419_v63 = vpop.f32.mrf.mxu0  ;;  %v579_v0 = vadd.f32 %v578_v55, %v1414_v37  ;;  %v741_v3 = vmul.f32 %v1429_v51, %v655_v45  ;;  %v743_v7 = vmul.f32 %v1431_v53, %v657_v52 }
  0xfa   : > { %v580_v2 = vpop.f32.mrf.mxu1  ;;  %v742_v4 = vmul.f32 %v1426_v48, %v656_v58  ;;  %v659_v5 = vmax.f32 %v418_v59, 0.0  ;;  %v420_v6 = vadd.f32 %v419_v63, %v1416_v38  ;;  %804 = vadd.xlane.f32.xlu0 %v803_v1  ;;  %v807_v12 = vadd.f32 %v806_v57, %v739_v50 }
  0xfb   : > { %v661_v8 = vmax.f32 %v579_v0, 0.0  ;;  %v423_v9 = vpop.f32.mrf.mxu0  ;;  %v581_v10 = vadd.f32 %v580_v2, %v1418_v39  ;;  %v744_v17 = vmul.f32 %v1435_v62, %v658_v61 }
  0xfc   : > { %v584_v11 = vpop.f32.mrf.mxu1  ;;  %v811_v13 = vadd.f32 %v742_v4, %v741_v3  ;;  %v660_v14 = vmax.f32 %v420_v6, 0.0  ;;  %v424_v15 = vadd.f32 %v423_v9, %v1412_v36  ;;  %v745_v16 = vmul.f32 %v1429_v51, %v659_v5 }
  0xfd   : > { %v425_v18 = vpop.f32.mrf.mxu0  ;;  %v585_v19 = vadd.f32 %v584_v11, %v1414_v37  ;;  %v808_v20 = vadd.f32 %v807_v12, %v740_v60  ;;  %v747_v26 = vmul.f32 %v1431_v53, %v661_v8  ;;  %v662_v27 = vmax.f32 %v581_v10, 0.0 }
  0xfe   : > { %v586_v21 = vpop.f32.mrf.mxu1  ;;  %v746_v22 = vmul.f32 %v1426_v48, %v660_v14  ;;  %v663_v23 = vmax.f32 %v424_v15, 0.0  ;;  %v426_v24 = vadd.f32 %v425_v18, %v1416_v38  ;;  %v812_v33 = vadd.f32 %v811_v13, %v743_v7 }
  0xff   : > { %v587_v25 = vadd.f32 %v586_v21, %v1418_v39  ;;  %v665_v28 = vmax.f32 %v585_v19, 0.0  ;;  %809 = vadd.xlane.f32.xlu1 %v808_v20  ;;  %v429_v31 = vpop.f32.mrf.mxu0  ;;  %v748_v54 = vmul.f32 %v1435_v62, %v662_v27 }
 0x100   : > { %v590_v32 = vpop.f32.mrf.mxu1  ;;  %v816_v34 = vadd.f32 %v746_v22, %v745_v16  ;;  %v664_v35 = vmax.f32 %v426_v24, 0.0  ;;  %v430_v40 = vadd.f32 %v429_v31, %v1412_v36  ;;  %v749_v41 = vmul.f32 %v1429_v51, %v663_v23 }
 0x101   : > { %v666_v42 = vmax.f32 %v587_v25, 0.0  ;;  %v431_v43 = vpop.f32.mrf.mxu0  ;;  %v591_v44 = vadd.f32 %v590_v32, %v1414_v37  ;;  %v813_v45 = vadd.f32 %v812_v33, %v744_v17  ;;  %v751_v55 = vmul.f32 %v1431_v53, %v665_v28 }
 0x102   : > { %v592_v46 = vpop.f32.mrf.mxu1  ;;  %v750_v47 = vmul.f32 %v1426_v48, %v664_v35  ;;  %v667_v49 = vmax.f32 %v430_v40, 0.0  ;;  %v432_v50 = vadd.f32 %v431_v43, %v1416_v38  ;;  %v817_v59 = vadd.f32 %v816_v34, %v747_v26 }
 0x103   : > { %v593_v52 = vadd.f32 %v592_v46, %v1418_v39  ;;  %v669_v56 = vmax.f32 %v591_v44, 0.0  ;;  %814 = vadd.xlane.f32.xlu0 %v813_v45  ;;  %v435_v57 = vpop.f32.mrf.mxu0  ;;  %v752_v0 = vmul.f32 %v1435_v62, %v666_v42 }
 0x104   : > { %v596_v58 = vpop.f32.mrf.mxu1  ;;  %v821_v60 = vadd.f32 %v750_v47, %v749_v41  ;;  %v668_v61 = vmax.f32 %v432_v50, 0.0  ;;  %v436_v63 = vadd.f32 %v435_v57, %v1412_v36  ;;  %v818_v4 = vadd.f32 %v817_v59, %v748_v54 }
 0x105   : > { %v670_v1 = vmax.f32 %v593_v52, 0.0  ;;  %v437_v2 = vpop.f32.mrf.mxu0  ;;  %v597_v3 = vadd.f32 %v596_v58, %v1414_v37  ;;  %v753_v6 = vmul.f32 %v1429_v51, %v667_v49  ;;  %v755_v10 = vmul.f32 %v1431_v53, %v669_v56 }
 0x106   : > { %v598_v5 = vpop.f32.mrf.mxu1  ;;  %v754_v7 = vmul.f32 %v1426_v48, %v668_v61  ;;  %v671_v8 = vmax.f32 %v436_v63, 0.0  ;;  %v438_v9 = vadd.f32 %v437_v2, %v1416_v38  ;;  %819 = vadd.xlane.f32.xlu1 %v818_v4  ;;  %v822_v15 = vadd.f32 %v821_v60, %v751_v55 }
 0x107   : > { %v673_v11 = vmax.f32 %v597_v3, 0.0  ;;  %v441_v12 = vpop.f32.mrf.mxu0  ;;  %v599_v13 = vadd.f32 %v598_v5, %v1418_v39  ;;  %v756_v20 = vmul.f32 %v1435_v62, %v670_v1 }
 0x108   : > { %v602_v14 = vpop.f32.mrf.mxu1  ;;  %v826_v16 = vadd.f32 %v754_v7, %v753_v6  ;;  %v672_v17 = vmax.f32 %v438_v9, 0.0  ;;  %v442_v18 = vadd.f32 %v441_v12, %v1412_v36  ;;  %v757_v19 = vmul.f32 %v1429_v51, %v671_v8 }
 0x109   : > { %v443_v21 = vpop.f32.mrf.mxu0  ;;  %v603_v22 = vadd.f32 %v602_v14, %v1414_v37  ;;  %v823_v23 = vadd.f32 %v822_v15, %v752_v0  ;;  %v759_v31 = vmul.f32 %v1431_v53, %v673_v11  ;;  %v674_v32 = vmax.f32 %v599_v13, 0.0 }
 0x10a   : > { %v604_v24 = vpop.f32.mrf.mxu1  ;;  %v758_v25 = vmul.f32 %v1426_v48, %v672_v17  ;;  %v675_v26 = vmax.f32 %v442_v18, 0.0  ;;  %v444_v27 = vadd.f32 %v443_v21, %v1416_v38  ;;  %v827_v40 = vadd.f32 %v826_v16, %v755_v10 }
 0x10b   : > { %v605_v28 = vadd.f32 %v604_v24, %v1418_v39  ;;  %v677_v33 = vmax.f32 %v603_v22, 0.0  ;;  %824 = vadd.xlane.f32.xlu0 %v823_v23  ;;  %v447_v34 = vpop.f32.mrf.mxu0  ;;  %v760_v57 = vmul.f32 %v1435_v62, %v674_v32 }
 0x10c   : > { %v608_v35 = vpop.f32.mrf.mxu1  ;;  %v831_v41 = vadd.f32 %v758_v25, %v757_v19  ;;  %v676_v42 = vmax.f32 %v444_v27, 0.0  ;;  %v448_v43 = vadd.f32 %v447_v34, %v1412_v36  ;;  %v761_v44 = vmul.f32 %v1429_v51, %v675_v26 }
 0x10d   : > { %v678_v45 = vmax.f32 %v605_v28, 0.0  ;;  %v449_v46 = vpop.f32.mrf.mxu0  ;;  %v609_v47 = vadd.f32 %v608_v35, %v1414_v37  ;;  %v828_v49 = vadd.f32 %v827_v40, %v756_v20  ;;  %v763_v58 = vmul.f32 %v1431_v53, %v677_v33 }
 0x10e   : > { %v610_v50 = vpop.f32.mrf.mxu1  ;;  %v762_v52 = vmul.f32 %v1426_v48, %v676_v42  ;;  %v679_v54 = vmax.f32 %v448_v43, 0.0  ;;  %v450_v55 = vadd.f32 %v449_v46, %v1416_v38  ;;  %v832_v63 = vadd.f32 %v831_v41, %v759_v31 }
 0x10f   : > { %v611_v56 = vadd.f32 %v610_v50, %v1418_v39  ;;  %v681_v59 = vmax.f32 %v609_v47, 0.0  ;;  %829 = vadd.xlane.f32.xlu1 %v828_v49  ;;  %v453_v60 = vpop.f32.mrf.mxu0  ;;  %v764_v3 = vmul.f32 %v1435_v62, %v678_v45 }
 0x110   : > { %v614_v61 = vpop.f32.mrf.mxu1  ;;  %v836_v0 = vadd.f32 %v762_v52, %v761_v44  ;;  %v680_v1 = vmax.f32 %v450_v55, 0.0  ;;  %v454_v2 = vadd.f32 %v453_v60, %v1412_v36  ;;  %v833_v7 = vadd.f32 %v832_v63, %v760_v57 }
 0x111   : > { %v682_v4 = vmax.f32 %v611_v56, 0.0  ;;  %v455_v5 = vpop.f32.mrf.mxu0  ;;  %v615_v6 = vadd.f32 %v614_v61, %v1414_v37  ;;  %v765_v9 = vmul.f32 %v1429_v51, %v679_v54  ;;  %v767_v13 = vmul.f32 %v1431_v53, %v681_v59 }
 0x112   : > { %v616_v8 = vpop.f32.mrf.mxu1  ;;  %v766_v10 = vmul.f32 %v1426_v48, %v680_v1  ;;  %v683_v11 = vmax.f32 %v454_v2, 0.0  ;;  %v456_v12 = vadd.f32 %v455_v5, %v1416_v38  ;;  %834 = vadd.xlane.f32.xlu0 %v833_v7  ;;  %v837_v18 = vadd.f32 %v836_v0, %v763_v58 }
 0x113   : > { %v685_v14 = vmax.f32 %v615_v6, 0.0  ;;  %v459_v15 = vpop.f32.mrf.mxu0  ;;  %v617_v16 = vadd.f32 %v616_v8, %v1418_v39  ;;  %v768_v23 = vmul.f32 %v1435_v62, %v682_v4 }
 0x114   : > { %v620_v17 = vpop.f32.mrf.mxu1  ;;  %v841_v19 = vadd.f32 %v766_v10, %v765_v9  ;;  %v684_v20 = vmax.f32 %v456_v12, 0.0  ;;  %v460_v21 = vadd.f32 %v459_v15, %v1412_v36  ;;  %v769_v22 = vmul.f32 %v1429_v51, %v683_v11 }
 0x115   : > { %v461_v24 = vpop.f32.mrf.mxu0  ;;  %v621_v25 = vadd.f32 %v620_v17, %v1414_v37  ;;  %v838_v26 = vadd.f32 %v837_v18, %v764_v3  ;;  %v771_v34 = vmul.f32 %v1431_v53, %v685_v14  ;;  %v686_v35 = vmax.f32 %v617_v16, 0.0 }
 0x116   : > { %v622_v27 = vpop.f32.mrf.mxu1  ;;  %v770_v28 = vmul.f32 %v1426_v48, %v684_v20  ;;  %v687_v31 = vmax.f32 %v460_v21, 0.0  ;;  %v462_v32 = vadd.f32 %v461_v24, %v1416_v38  ;;  %v842_v43 = vadd.f32 %v841_v19, %v767_v13 }
 0x117   : > { %v623_v33 = vadd.f32 %v622_v27, %v1418_v39  ;;  %v689_v40 = vmax.f32 %v621_v25, 0.0  ;;  %839 = vadd.xlane.f32.xlu1 %v838_v26  ;;  %v465_v41 = vpop.f32.mrf.mxu0  ;;  %v772_v61 = vmul.f32 %v1435_v62, %v686_v35  ;;  %v878_v14 = vand.u32 127, %v227_v29 }
 0x118   : > { %v626_v42 = vpop.f32.mrf.mxu1  ;;  %v846_v44 = vadd.f32 %v770_v28, %v769_v22  ;;  %v773_v45 = vmul.f32 %v1429_v51, %v687_v31  ;;  %v688_v46 = vmax.f32 %v462_v32, 0.0  ;;  %v466_v47 = vadd.f32 %v465_v41, %v1412_v36 }
 0x119   : > { %v775_v49 = vmul.f32 %v1431_v53, %v689_v40  ;;  %v690_v50 = vmax.f32 %v623_v33, 0.0  ;;  %v467_v52 = vpop.f32.mrf.mxu0  ;;  %v627_v54 = vadd.f32 %v626_v42, %v1414_v37  ;;  %v843_v55 = vadd.f32 %v842_v43, %v768_v23 }
 0x11a   : > { %v628_v56 = vpop.f32.mrf.mxu1  ;;  %v774_v57 = vmul.f32 %v1426_v48, %v688_v46  ;;  %v691_v58 = vmax.f32 %v466_v47, 0.0  ;;  %v468_v59 = vadd.f32 %v467_v52, %v1416_v38  ;;  %v847_v36 = vadd.f32 %v846_v44, %v771_v34 }
 0x11b   : > { %v629_v60 = vadd.f32 %v628_v56, %v1418_v39  ;;  %v693_v63 = vmax.f32 %v627_v54, 0.0  ;;  %844 = vadd.xlane.f32.xlu0 %v843_v55  ;;  %v776_v37 = vmul.f32 %v1435_v62, %v690_v50  ;;  %v883_v15 = vadd.s32 4294967288, %v878_v14 }
 0x11c   : > { %v851_v0 = vadd.f32 %v774_v57, %v773_v45  ;;  %v692_v1 = vmax.f32 %v468_v59, 0.0  ;;  %v777_v2 = vmul.f32 %v1429_v51, %v691_v58  ;;  %v848_v3 = vadd.f32 %v847_v36, %v772_v61 }
 0x11d   : > { %v779_v5 = vmul.f32 %v1431_v53, %v693_v63  ;;  %v694_v6 = vmax.f32 %v629_v60, 0.0  ;;  %v890_v53 = vadd.s32 4294967280, %v878_v14  ;;  %v897_v17 = vadd.s32 4294967272, %v878_v14 }
 0x11e   : > { %v778_v4 = vmul.f32 %v1426_v48, %v692_v1  ;;  %v852_v38 = vadd.f32 %v851_v0, %v775_v49  ;;  %849 = vadd.xlane.f32.xlu1 %v848_v3  ;;  %v904_v18 = vadd.s32 4294967264, %v878_v14  ;;  %v886_v20 = vsub.s32 %v883_v15, %v1403_v30 }
 0x11f   : > { %v780_v8 = vmul.f32 %v1435_v62, %v694_v6  ;;  %v911_v62 = vadd.s32 4294967256, %v878_v14  ;;  %v893_v21 = vsub.s32 %v890_v53, %v1403_v30  ;;  %v918_v22 = vadd.s32 4294967248, %v878_v14 }
 0x120   : > { %v856_v39 = vadd.f32 %v778_v4, %v777_v2  ;;  %v853_v7 = vadd.f32 %v852_v38, %v776_v37  ;;  %v881_v24 = vsub.s32 %v878_v14, %v1403_v30  ;;  %v900_v25 = vsub.s32 %v897_v17, %v1403_v30 }
 0x121   : > { %v925_v29 = vadd.s32 4294967240, %v878_v14  ;;  %v907_v26 = vsub.s32 %v904_v18, %v1403_v30  ;;  %v932_v27 = vadd.s32 4294967232, %v878_v14  ;;  %v914_v32 = vsub.s32 %v911_v62, %v1403_v30 }
 0x122   : > { %854 = vadd.xlane.f32.xlu0 %v853_v7  ;;  %v857_v9 = vadd.f32 %v856_v39, %v779_v5  ;;  %v939_v33 = vadd.s32 4294967224, %v878_v14  ;;  %v921_v35 = vsub.s32 %v918_v22, %v1403_v30  ;;  %v946_v41 = vadd.s32 4294967216, %v878_v14 }
 0x123   : > { %v928_v44 = vsub.s32 %v925_v29, %v1403_v30  ;;  %v953_v45 = vadd.s32 4294967208, %v878_v14  ;;  %v935_v47 = vsub.s32 %v932_v27, %v1403_v30  ;;  %v960_v50 = vadd.s32 4294967200, %v878_v14 }
 0x124   : > { %v858_v10 = vadd.f32 %v857_v9, %v780_v8  ;;  %v942_v55 = vsub.s32 %v939_v33, %v1403_v30  ;;  %v967_v56 = vadd.s32 4294967192, %v878_v14  ;;  %v949_v59 = vsub.s32 %v946_v41, %v1403_v30 }
 0x125   : > { %v974_v61 = vadd.s32 4294967184, %v878_v14  ;;  %v956_v0 = vsub.s32 %v953_v45, %v1403_v30  ;;  %v963_v37 = vsub.s32 %v960_v50, %v1403_v30  ;;  %v981_v38 = vadd.s32 4294967176, %v878_v14 }
 0x126   : > { %859 = vadd.xlane.f32.xlu1 %v858_v10  ;;  %v970_v6 = vsub.s32 %v967_v56, %v1403_v30 }
 0x127   : > { %v977_v9 = vsub.s32 %v974_v61, %v1403_v30  ;;  %v984_v15 = vsub.s32 %v981_v38, %v1403_v30 }
 0x173   : > { %v785_v11 = vpop.xlane.xlu0 %784 }
 0x174   : > { %v882_v42 = vrot.slane %v785_v11, %v881_v24 }
 0x177   : > { %v790_v12 = vpop.xlane.xlu0 %789 }
 0x178   : > { %v887_v31 = vrot.slane %v790_v12, %v886_v20 }
 0x17a   : > { %v889_v52 = vsel %vm888_vm2, %v887_v31, %v882_v42 }
 0x17c   : > { %v795_v51 = vpop.xlane.xlu1 %794 }
 0x17d   : > { %v894_v34 = vrot.slane %v795_v51, %v893_v21 }
 0x17f   : > { %v896_v57 = vsel %vm895_vm3, %v894_v34, %v889_v52 }
 0x180   : > { %v800_v13 = vpop.xlane.xlu1 %799 }
 0x181   : > { %v901_v43 = vrot.slane %v800_v13, %v900_v25 }
 0x183   : > { %v805_v48 = vpop.xlane.xlu0 %804  ;;  %v903_v63 = vsel %vm902_vm4, %v901_v43, %v896_v57 }
 0x184   : > { %v908_v46 = vrot.slane %v805_v48, %v907_v26 }
 0x186   : > { %v910_v1 = vsel %vm909_vm5, %v908_v46, %v903_v63 }
 0x188   : > { %v810_v16 = vpop.xlane.xlu1 %809 }
 0x189   : > { %v915_v54 = vrot.slane %v810_v16, %v914_v32 }
 0x18b   : > { %v917_v4 = vsel %vm916_vm6, %v915_v54, %v910_v1 }
 0x18c   : > { %v815_v19 = vpop.xlane.xlu0 %814 }
 0x18d   : > { %v922_v58 = vrot.slane %v815_v19, %v921_v35 }
 0x18f   : > { %v820_v23 = vpop.xlane.xlu1 %819  ;;  %v924_v39 = vsel %vm923_vm7, %v922_v58, %v917_v4 }
 0x190   : > { %v929_v36 = vrot.slane %v820_v23, %v928_v44 }
 0x192   : > { %v931_v10 = vsel %vm930_vm8, %v929_v36, %v924_v39 }
 0x194   : > { %v825_v28 = vpop.xlane.xlu0 %824 }
 0x195   : > { %v936_v2 = vrot.slane %v825_v28, %v935_v47 }
 0x197   : > { %v938_v51 = vsel %vm937_vm9, %v936_v2, %v931_v10 }
 0x198   : > { %v830_v40 = vpop.xlane.xlu1 %829 }
 0x199   : > { %v943_v5 = vrot.slane %v830_v40, %v942_v55 }
 0x19b   : > { %v835_v49 = vpop.xlane.xlu0 %834  ;;  %v945_v48 = vsel %vm944_vm10, %v943_v5, %v938_v51 }
 0x19c   : > { %v950_v7 = vrot.slane %v835_v49, %v949_v59 }
 0x19e   : > { %v952_v53 = vsel %vm951_vm11, %v950_v7, %v945_v48 }
 0x1a0   : > { %v840_v60 = vpop.xlane.xlu1 %839 }
 0x1a1   : > { %v957_v11 = vrot.slane %v840_v60, %v956_v0 }
 0x1a3   : > { %v959_v17 = vsel %vm958_vm12, %v957_v11, %v952_v53 }
 0x1a4   : > { %v845_v3 = vpop.xlane.xlu0 %844 }
 0x1a5   : > { %v964_v12 = vrot.slane %v845_v3, %v963_v37 }
 0x1a7   : > { %v850_v8 = vpop.xlane.xlu1 %849  ;;  %v966_v18 = vsel %vm965_vm13, %v964_v12, %v959_v17 }
 0x1a8   : > { %v971_v14 = vrot.slane %v850_v8, %v970_v6 }
 0x1aa   : > { %v973_v20 = vsel %vm972_vm14, %v971_v14, %v966_v18 }
 0x1ab   : > { %v855_v13 = vpop.xlane.xlu0 %854 }
 0x1ac   : > { %v978_v16 = vrot.slane %v855_v13, %v977_v9 }
 0x1ae   : > { %v980_v21 = vsel %vm979_vm15, %v978_v16, %v973_v20 }
 0x1af   : > { %v860_v19 = vpop.xlane.xlu1 %859 }
 0x1b0   : > { %v985_v62 = vrot.slane %v860_v19, %v984_v15 }
 0x1b2   : > { %v987_v30 = vsel %vm986_vm0, %v985_v62, %v980_v21 }
 0x1b3   : > { %989 = vst [vmem:[%s190_s28] sm:$0x1] %v987_v30 }
 0x1b4   : > { %1156 = shalt.err (!%p1153_p3)
}
 0x1b5   : > { %s1157_s23 = scalar_lea.hbm %s1591_s6, 16  ;;  %s1161_s13 = scalar_lea.hbm %s1632_s4, 32 }
 0x1b6   : > { %p1158_p4 = scmp.ne.s32.totalorder %s1591_s6, %s1157_s23  ;;  %p1162_p9 = scmp.lt.s32.totalorder %s1591_s6, %s1632_s4 }
 0x1b7   : > { %p1163_p10 = scmp.lt.s32.totalorder %s1161_s13, %s1157_s23 }
 0x1b8   : > { %p1159_p7 = pnand %p1158_p4, %p1267_p5 }
 0x1b9   : > { %p1164_p11 = por %p1163_p10, %p1162_p9 }
 0x1ba   : > { %p1160_p8 = pneg %p1159_p7 }
 0x1bc   : > { %p1165_p12 = pnand %p1164_p11, %p1160_p8 }
 0x1be   : > { %1168 = shalt.err (!%p1165_p12)
}
 0x1bf   : > { %1103 = dma.vmem_to_hbm [thread:$0]  (%p1267_p5), %s1004_s29, 16, %s1591_s6, %s991_s19  }
 0x1c0 PF: > { %p1109_p13 = scmp.ge.s32.totalorder %s1203_s18, 2  ;;  %s1015_s22 = sand.u32 1, %s1191_s15  }
 0x1c1   : > { %s1016_s27 = scalar_lea.sflag [#allocation3], %s1015_s22 }
 0x1c2   : > { %p1106_p0 = pnand %p1109_p13, %p1271_p6 }
 0x1c4   : > { %p1107_p1 = pneg %p1106_p0 }
 0x1c6   : > { %1186 = dma.done.wait (%p1107_p1), %s1016_s27, 16  }
 0x1c7   : > { %1188 = vsyncadd (%p1107_p1), %s1016_s27, 4294967280  ;;  %p14_p2 = scmp.ge.s32.totalorder %s1255_s21, 4   ;;  %s1635_s15 = smov %s1195_s16 }
 0x1c8   : > { %s1636_s16 = smov %s1199_s17  ;;  %s1637_s17 = smov %s1265_s24 }
 0x1c9   : > { %s1638_s18 = smov %s1255_s21  ;;  %16 = sbr.rel (!%p14_p2) target bundleno = 3 (0x3), region = 71 }
 0x1ce   :  { %1020 = vsyncpa [#allocation3], 1 }
 0x1cf   :  { %1022 = vsyncpa [#allocation3 + $0x1], 1 }

</bundles_post_ra>
